<compile_context>
chip_gen: v7x
topology: tpu7x:2x2x1
jax: 0.10.0
libtpu: 0.0.40
codegen_flags: <defaults>
</compile_context>

<pallas_src>
import functools

import jax
import jax.numpy as jnp
from jax.experimental import pallas as pl
from jax.experimental.pallas import tpu as pltpu

NEG_SLOPE = 0.2
BN_EPS = 1e-5
LANE = 128


def _round_up(n, m):
    return ((n + m - 1) // m) * m


def _leaky_relu(x):
    # mul + max (2 VALU ops) instead of cmp + select (3).
    return jnp.maximum(x, NEG_SLOPE * x)


def _bn_train_folded(h, gamma, beta):
    """Training-mode BatchNorm1d forward with folded per-feature scale/shift."""
    mean = jnp.mean(h, axis=0, keepdims=True)
    c = h - mean
    var = jnp.mean(c * c, axis=0, keepdims=True)
    scale = gamma * jax.lax.rsqrt(var + BN_EPS)     # per-feature row, EUP rsqrt
    return c * scale + beta


def _resblock_kernel(x_ref, w1_ref, g1_ref, be1_ref, w2_ref, g2_ref, be2_ref,
                     *rest, final_nl, has_proj):
    if has_proj:
        w3_ref, b3_ref, o_ref = rest
        # x arrives already bf16-padded (host cast once per step); f32 copy never needed.
        x_bf = x_ref[...]
        xin = _leaky_relu(
            jnp.dot(x_bf, w3_ref[...], preferred_element_type=jnp.float32) + b3_ref[...]
        )
    else:
        (o_ref,) = rest
        x = x_ref[...]                      # f32: residual needs full precision
        x_bf = x.astype(jnp.bfloat16)       # bf16 copy for the MXU only
        xin = x

    # Main path: fc1 (bias folded away by training-mode BN) -> bn1 -> leaky -> fc2 -> bn2.
    h = jnp.dot(x_bf, w1_ref[...], preferred_element_type=jnp.float32)
    h = _leaky_relu(_bn_train_folded(h, g1_ref[...], be1_ref[...]))
    h = jnp.dot(h.astype(jnp.bfloat16), w2_ref[...], preferred_element_type=jnp.float32)
    h = _bn_train_folded(h, g2_ref[...], be2_ref[...])

    out = xin + h
    if final_nl:
        out = _leaky_relu(out)
    o_ref[...] = out.astype(o_ref.dtype)


class ResBlockKernel:
    """Fused ResBlock forward.  Parameter padding/casting happens ONCE at construction."""

    def __init__(self, params):
        f32, bf16 = jnp.float32, jnp.bfloat16
        Fin, N = params["w1"].shape
        Fout = params["w2"].shape[1]
        self.Fin, self.N, self.Fout = Fin, N, Fout
        self.has_proj = "w3" in params

        Fin_p = _round_up(Fin, LANE)
        N_p = _round_up(N, LANE)
        Fout_p = _round_up(Fout, LANE)
        self.Fin_p, self.N_p, self.Fout_p = Fin_p, N_p, Fout_p

        # One-time lane-dense padding of feature dims; weights pre-cast to bf16.
        # b1/b2 are intentionally dropped: training-mode BN mean subtraction cancels
        # any per-feature constant exactly.
        self._params = [
            jnp.pad(params["w1"], ((0, Fin_p - Fin), (0, N_p - N))).astype(bf16),
            jnp.pad(params["g1"], ((0, 0), (0, N_p - N)), constant_values=1.0).astype(f32),
            jnp.pad(params["be1"], ((0, 0), (0, N_p - N))).astype(f32),
            jnp.pad(params["w2"], ((0, N_p - N), (0, Fout_p - Fout))).astype(bf16),
            jnp.pad(params["g2"], ((0, 0), (0, Fout_p - Fout)), constant_values=1.0).astype(f32),
            jnp.pad(params["be2"], ((0, 0), (0, Fout_p - Fout))).astype(f32),
        ]
        if self.has_proj:
            self._params += [
                jnp.pad(params["w3"], ((0, Fin_p - Fin), (0, Fout_p - Fout))).astype(bf16),
                jnp.pad(params["b3"], ((0, 0), (0, Fout_p - Fout))).astype(f32),
            ]
        # Make sure the one-time prep is materialized now, not on the first forward.
        self._params = [jax.block_until_ready(p) for p in self._params]

    # ---- per-step path -------------------------------------------------------------

    def _vmem_limit_bytes(self, B, in_bytes):
        out_bytes = B * self.Fout_p * 4
        live = (
            in_bytes + out_bytes
            + B * self.Fin_p * 2                    # in-kernel bf16 copy of x (identity case)
            + B * self.N_p * (4 + 4 + 2)            # h, centered h, bf16 h
            + B * self.Fout_p * (4 + 4 + 4)         # xin, bn2 temps, out
        )
        # generous headroom, floored at the v5e scoped default, capped at v7x physical VMEM.
        return int(min(64 << 20, max(2 * live + (1 << 20), 16 << 20)))

    def __call__(self, x, final_nl=True, slice_output=True):
        B, Fin = x.shape
        assert Fin == self.Fin
        f32 = jnp.float32

        # Activation padding is the only per-step prep.  With a projection, feed bf16
        # directly (the f32 copy is never used in-kernel); otherwise keep f32 for the
        # residual add.
        x_dtype = jnp.bfloat16 if self.has_proj else f32
        x_p = x.astype(x_dtype)
        if self.Fin_p != Fin:
            x_p = jnp.pad(x_p, ((0, 0), (0, self.Fin_p - Fin)))

        args = [x_p] + self._params
        in_bytes = sum(int(a.size) * a.dtype.itemsize for a in args)

        flops = 2 * B * (self.Fin_p * self.N_p + self.N_p * self.Fout_p
                         + (self.Fin_p * self.Fout_p if self.has_proj else 0))
        cost = pl.CostEstimate(
            flops=flops,
            transcendentals=self.N_p + self.Fout_p,       # per-feature rsqrt
            bytes_accessed=in_bytes + B * self.Fout_p * 4,
        )

        kernel = functools.partial(_resblock_kernel, final_nl=final_nl,
                                   has_proj=self.has_proj)
        vmem_spec = pl.BlockSpec(memory_space=pltpu.MemorySpace.VMEM)

        out_p = pl.pallas_call(
            kernel,
            out_shape=jax.ShapeDtypeStruct((B, self.Fout_p), f32),
            in_specs=[vmem_spec] * len(args),
            out_specs=vmem_spec,
            cost_estimate=cost,
            compiler_params=pltpu.CompilerParams(
                vmem_limit_bytes=self._vmem_limit_bytes(B, in_bytes)),
        )(*args)

        if slice_output and self.Fout_p != self.Fout:
            return out_p[:, :self.Fout]
        return out_p


def resblock_forward(x, params, final_nl=True):
    """Convenience wrapper: builds the prepared kernel and runs it once.
    For repeated use, construct ResBlockKernel(params) once and call it per step."""
    return ResBlockKernel(params)(x, final_nl=final_nl)


# --------------------------- pure-JAX references ---------------------------

def _bn_train_ref(x, gamma, beta):
    mean = jnp.mean(x, axis=0, keepdims=True)
    var = jnp.mean((x - mean) * (x - mean), axis=0, keepdims=True)
    return (x - mean) * jax.lax.rsqrt(var + BN_EPS) * gamma + beta


def resblock_reference(x, params, final_nl=True, matmul_dtype=jnp.float32):
    """Pure-JAX reference of the PyTorch forward (training-mode BN, biases included)."""
    def mm(a, w):
        return jnp.dot(a.astype(matmul_dtype), w.astype(matmul_dtype),
                       preferred_element_type=jnp.float32)

    x = x.astype(jnp.float32)
    if "w3" in params:
        xin = _leaky_relu(mm(x, params["w3"]) + params["b3"])
    else:
        xin = x
    h = mm(x, params["w1"]) + params["b1"]
    h = _leaky_relu(_bn_train_ref(h, params["g1"], params["be1"]))
    h = mm(h, params["w2"]) + params["b2"]
    h = _bn_train_ref(h, params["g2"], params["be2"])
    out = xin + h
    return _leaky_relu(out) if final_nl else out


def make_params(key, Fin, Fout, n_neurons):
    ks = jax.random.split(key, 8)
    params = {
        "w1": jax.random.normal(ks[0], (Fin, n_neurons), jnp.float32) * 0.05,
        "b1": jax.random.normal(ks[1], (1, n_neurons), jnp.float32) * 0.05,
        "g1": 1.0 + 0.1 * jax.random.normal(ks[2], (1, n_neurons), jnp.float32),
        "be1": 0.1 * jax.random.normal(ks[3], (1, n_neurons), jnp.float32),
        "w2": jax.random.normal(ks[4], (n_neurons, Fout), jnp.float32) * 0.05,
        "b2": jax.random.normal(ks[5], (1, Fout), jnp.float32) * 0.05,
        "g2": 1.0 + 0.1 * jax.random.normal(ks[6], (1, Fout), jnp.float32),
        "be2": 0.1 * jax.random.normal(ks[7], (1, Fout), jnp.float32),
    }
    if Fin != Fout:
        k3a, k3b = jax.random.split(jax.random.fold_in(key, 123))
        params["w3"] = jax.random.normal(k3a, (Fin, Fout), jnp.float32) * 0.05
        params["b3"] = jax.random.normal(k3b, (1, Fout), jnp.float32) * 0.05
    return params


if __name__ == "__main__":
    key = jax.random.PRNGKey(0)
    B, Fin, Fout, n_neurons = 8, 16, 32, 64

    kx, kp = jax.random.split(key)
    x = jax.random.normal(kx, (B, Fin), jnp.float32)
    params = make_params(kp, Fin, Fout, n_neurons)

    # Projection-residual variant (Fin != Fout): one-time prepare, then forward.
    block = ResBlockKernel(params)
    out = jax.block_until_ready(block(x, final_nl=True))
    assert out.shape == (B, Fout)

    # Tight check against a reference using the same bf16 MXU inputs.
    ref_bf = resblock_reference(x, params, final_nl=True, matmul_dtype=jnp.bfloat16)
    assert jnp.allclose(out, ref_bf, atol=1e-3, rtol=1e-3), "mismatch vs bf16-matmul reference"
    # Loose check against the full-f32 PyTorch-semantics reference.
    ref_f32 = resblock_reference(x, params, final_nl=True, matmul_dtype=jnp.float32)
    assert jnp.allclose(out, ref_f32, atol=5e-2, rtol=5e-2), "mismatch vs f32 reference"

    # Padded-output (no post-call slice) path: padded lanes must match on the valid slab.
    out_pad = jax.block_until_ready(block(x, final_nl=True, slice_output=False))
    assert out_pad.shape[1] % LANE == 0
    assert jnp.allclose(out_pad[:, :Fout], out, atol=0, rtol=0)

    # Identity-residual variant (Fin == Fout) with final_nl=False.
    params_sq = make_params(jax.random.fold_in(kp, 7), Fout, Fout, n_neurons)
    x_sq = jax.random.normal(jax.random.fold_in(kx, 7), (B, Fout), jnp.float32)
    block_sq = ResBlockKernel(params_sq)
    out_sq = jax.block_until_ready(block_sq(x_sq, final_nl=False))
    ref_sq_bf = resblock_reference(x_sq, params_sq, final_nl=False, matmul_dtype=jnp.bfloat16)
    ref_sq_f32 = resblock_reference(x_sq, params_sq, final_nl=False, matmul_dtype=jnp.float32)
    assert jnp.allclose(out_sq, ref_sq_bf, atol=1e-3, rtol=1e-3), "identity-variant mismatch (bf16 ref)"
    assert jnp.allclose(out_sq, ref_sq_f32, atol=5e-2, rtol=5e-2), "identity-variant mismatch (f32 ref)"

    print("KERNEL_OK")
</pallas_src>

<mosaic_0001>
module attributes {stable_mosaic.version = 11 : i64} {
  func.func @_resblock_kernel(%arg0: memref<8x128xbf16, #tpu.memory_space<vmem>>, %arg1: memref<128x128xbf16, #tpu.memory_space<vmem>>, %arg2: memref<1x128xf32, #tpu.memory_space<vmem>>, %arg3: memref<1x128xf32, #tpu.memory_space<vmem>>, %arg4: memref<128x128xbf16, #tpu.memory_space<vmem>>, %arg5: memref<1x128xf32, #tpu.memory_space<vmem>>, %arg6: memref<1x128xf32, #tpu.memory_space<vmem>>, %arg7: memref<128x128xbf16, #tpu.memory_space<vmem>>, %arg8: memref<1x128xf32, #tpu.memory_space<vmem>>, %arg9: memref<8x128xf32, #tpu.memory_space<vmem>>) attributes {dimension_semantics = [], scalar_prefetch = 0 : i64, scratch_operands = 0 : i64, tpu.core_type = #tpu.core_type<tc>} {
    %c0 = arith.constant 0 : index
    %c0_0 = arith.constant 0 : index
    %0 = vector.load %arg0[%c0, %c0_0] : memref<8x128xbf16, #tpu.memory_space<vmem>>, vector<8x128xbf16>
    %c0_1 = arith.constant 0 : index
    %c0_2 = arith.constant 0 : index
    %1 = vector.load %arg7[%c0_1, %c0_2] : memref<128x128xbf16, #tpu.memory_space<vmem>>, vector<128x128xbf16>
    %cst = arith.constant dense<0.000000e+00> : vector<8x128xf32>
    %2 = tpu.matmul %0, %1, %cst {dimension_numbers = #tpu.dot_dimension_numbers<[1], [0], [0], [1], [0, 0, 1, 1], [], []>} : vector<8x128xbf16>, vector<128x128xbf16>, vector<8x128xf32> -> vector<8x128xf32>
    %c0_3 = arith.constant 0 : index
    %c0_4 = arith.constant 0 : index
    %3 = vector.load %arg8[%c0_3, %c0_4] : memref<1x128xf32, #tpu.memory_space<vmem>>, vector<1x128xf32>
    %4 = vector.broadcast %3 : vector<1x128xf32> to vector<8x128xf32>
    %5 = arith.addf %2, %4 : vector<8x128xf32>
    %cst_5 = arith.constant 2.000000e-01 : f32
    %6 = vector.broadcast %cst_5 : f32 to vector<8x128xf32>
    %7 = arith.mulf %6, %5 : vector<8x128xf32>
    %8 = arith.maximumf %5, %7 : vector<8x128xf32>
    %c0_6 = arith.constant 0 : index
    %c0_7 = arith.constant 0 : index
    %9 = vector.load %arg1[%c0_6, %c0_7] : memref<128x128xbf16, #tpu.memory_space<vmem>>, vector<128x128xbf16>
    %cst_8 = arith.constant dense<0.000000e+00> : vector<8x128xf32>
    %10 = tpu.matmul %0, %9, %cst_8 {dimension_numbers = #tpu.dot_dimension_numbers<[1], [0], [0], [1], [0, 0, 1, 1], [], []>} : vector<8x128xbf16>, vector<128x128xbf16>, vector<8x128xf32> -> vector<8x128xf32>
    %c0_9 = arith.constant 0 : index
    %c0_10 = arith.constant 0 : index
    %11 = vector.load %arg2[%c0_9, %c0_10] : memref<1x128xf32, #tpu.memory_space<vmem>>, vector<1x128xf32>
    %c0_11 = arith.constant 0 : index
    %c0_12 = arith.constant 0 : index
    %12 = vector.load %arg3[%c0_11, %c0_12] : memref<1x128xf32, #tpu.memory_space<vmem>>, vector<1x128xf32>
    %cst_13 = arith.constant dense<0.000000e+00> : vector<128xf32>
    %13 = vector.multi_reduction <add>, %10, %cst_13 [0] : vector<8x128xf32> to vector<128xf32>
    %14 = vector.shape_cast %13 : vector<128xf32> to vector<1x128xf32>
    %cst_14 = arith.constant 8.000000e+00 : f32
    %15 = vector.broadcast %cst_14 : f32 to vector<1x128xf32>
    %16 = arith.divf %14, %15 : vector<1x128xf32>
    %17 = vector.broadcast %16 : vector<1x128xf32> to vector<8x128xf32>
    %18 = arith.subf %10, %17 : vector<8x128xf32>
    %19 = arith.mulf %18, %18 : vector<8x128xf32>
    %cst_15 = arith.constant dense<0.000000e+00> : vector<128xf32>
    %20 = vector.multi_reduction <add>, %19, %cst_15 [0] : vector<8x128xf32> to vector<128xf32>
    %21 = vector.shape_cast %20 : vector<128xf32> to vector<1x128xf32>
    %cst_16 = arith.constant 8.000000e+00 : f32
    %22 = vector.broadcast %cst_16 : f32 to vector<1x128xf32>
    %23 = arith.divf %21, %22 : vector<1x128xf32>
    %cst_17 = arith.constant 9.99999974E-6 : f32
    %24 = vector.broadcast %cst_17 : f32 to vector<1x128xf32>
    %25 = arith.addf %23, %24 : vector<1x128xf32>
    %26 = math.rsqrt %25 : vector<1x128xf32>
    %27 = arith.mulf %11, %26 : vector<1x128xf32>
    %28 = vector.broadcast %27 : vector<1x128xf32> to vector<8x128xf32>
    %29 = arith.mulf %18, %28 : vector<8x128xf32>
    %30 = vector.broadcast %12 : vector<1x128xf32> to vector<8x128xf32>
    %31 = arith.addf %29, %30 : vector<8x128xf32>
    %cst_18 = arith.constant 2.000000e-01 : f32
    %32 = vector.broadcast %cst_18 : f32 to vector<8x128xf32>
    %33 = arith.mulf %32, %31 : vector<8x128xf32>
    %34 = arith.maximumf %31, %33 : vector<8x128xf32>
    %35 = arith.truncf %34 : vector<8x128xf32> to vector<8x128xbf16>
    %c0_19 = arith.constant 0 : index
    %c0_20 = arith.constant 0 : index
    %36 = vector.load %arg4[%c0_19, %c0_20] : memref<128x128xbf16, #tpu.memory_space<vmem>>, vector<128x128xbf16>
    %cst_21 = arith.constant dense<0.000000e+00> : vector<8x128xf32>
    %37 = tpu.matmul %35, %36, %cst_21 {dimension_numbers = #tpu.dot_dimension_numbers<[1], [0], [0], [1], [0, 0, 1, 1], [], []>} : vector<8x128xbf16>, vector<128x128xbf16>, vector<8x128xf32> -> vector<8x128xf32>
    %c0_22 = arith.constant 0 : index
    %c0_23 = arith.constant 0 : index
    %38 = vector.load %arg5[%c0_22, %c0_23] : memref<1x128xf32, #tpu.memory_space<vmem>>, vector<1x128xf32>
    %c0_24 = arith.constant 0 : index
    %c0_25 = arith.constant 0 : index
    %39 = vector.load %arg6[%c0_24, %c0_25] : memref<1x128xf32, #tpu.memory_space<vmem>>, vector<1x128xf32>
    %cst_26 = arith.constant dense<0.000000e+00> : vector<128xf32>
    %40 = vector.multi_reduction <add>, %37, %cst_26 [0] : vector<8x128xf32> to vector<128xf32>
    %41 = vector.shape_cast %40 : vector<128xf32> to vector<1x128xf32>
    %cst_27 = arith.constant 8.000000e+00 : f32
    %42 = vector.broadcast %cst_27 : f32 to vector<1x128xf32>
    %43 = arith.divf %41, %42 : vector<1x128xf32>
    %44 = vector.broadcast %43 : vector<1x128xf32> to vector<8x128xf32>
    %45 = arith.subf %37, %44 : vector<8x128xf32>
    %46 = arith.mulf %45, %45 : vector<8x128xf32>
    %cst_28 = arith.constant dense<0.000000e+00> : vector<128xf32>
    %47 = vector.multi_reduction <add>, %46, %cst_28 [0] : vector<8x128xf32> to vector<128xf32>
    %48 = vector.shape_cast %47 : vector<128xf32> to vector<1x128xf32>
    %cst_29 = arith.constant 8.000000e+00 : f32
    %49 = vector.broadcast %cst_29 : f32 to vector<1x128xf32>
    %50 = arith.divf %48, %49 : vector<1x128xf32>
    %cst_30 = arith.constant 9.99999974E-6 : f32
    %51 = vector.broadcast %cst_30 : f32 to vector<1x128xf32>
    %52 = arith.addf %50, %51 : vector<1x128xf32>
    %53 = math.rsqrt %52 : vector<1x128xf32>
    %54 = arith.mulf %38, %53 : vector<1x128xf32>
    %55 = vector.broadcast %54 : vector<1x128xf32> to vector<8x128xf32>
    %56 = arith.mulf %45, %55 : vector<8x128xf32>
    %57 = vector.broadcast %39 : vector<1x128xf32> to vector<8x128xf32>
    %58 = arith.addf %56, %57 : vector<8x128xf32>
    %59 = arith.addf %8, %58 : vector<8x128xf32>
    %cst_31 = arith.constant 2.000000e-01 : f32
    %60 = vector.broadcast %cst_31 : f32 to vector<8x128xf32>
    %61 = arith.mulf %60, %59 : vector<8x128xf32>
    %62 = arith.maximumf %59, %61 : vector<8x128xf32>
    %c0_32 = arith.constant 0 : index
    %c0_33 = arith.constant 0 : index
    %63 = vector.load %arg9[%c0_32, %c0_33] : memref<8x128xf32, #tpu.memory_space<vmem>>, vector<8x128xf32>
    tpu.vector_store %arg9[%c0_32, %c0_33], %62 {strides = array<i32>} : memref<8x128xf32, #tpu.memory_space<vmem>>, vector<8x128xf32>,
    return
  }
}

</mosaic_0001>

<bundles_post_ra>
// kernel: tpu_custom_call.1
= control target key start
LH: loop header
LB: loop body
LE: loop exit
PB: predicated region body
PF: predicated region fallthrough
CT: control target
= control target key end

     0   :  { %14 = vsyncpa [#allocation3], 0  ;;  %s946_s0 = inlined_call_operand.hbm [shape: bf16[8,128], index: 0, kind: input, shape index: {}]   ;;  %s947_s1 = inlined_call_operand.hbm [shape: bf16[128,128], index: 1, kind: input, shape index: {}]   ;;  %s948_s2 = inlined_call_operand.vmem [shape: f32[1,128], index: 2, kind: input, shape index: {}]   ;;  %s949_s3 = inlined_call_operand.vmem [shape: f32[1,128], index: 3, kind: input, shape index: {}]   ;;  %s950_s4 = inlined_call_operand.hbm [shape: bf16[128,128], index: 4, kind: input, shape index: {}]   ;;  %s951_s5 = inlined_call_operand.vmem [shape: f32[1,128], index: 5, kind: input, shape index: {}]   ;;  %s952_s6 = inlined_call_operand.vmem [shape: f32[1,128], index: 6, kind: input, shape index: {}]   ;;  %s953_s7 = inlined_call_operand.hbm [shape: bf16[128,128], index: 7, kind: input, shape index: {}]   ;;  %s954_s8 = inlined_call_operand.vmem [shape: f32[1,128], index: 8, kind: input, shape index: {}]   ;;  %s955_s9 = inlined_call_operand.hbm [shape: f32[8,128], index: 9, kind: output, shape index: {}]  }
   0x1   :  { %15 = vsyncpa [#allocation6], 0 }
   0x2   :  { %16 = vsyncpa [#allocation9], 0 }
   0x3   :  { %17 = vsyncpa [#allocation4], 0  ;;  %s773_s30 = smov [#allocation5]   ;;  %s655_s13 = scalar_lea.hbm %s947_s1, 1024 }
   0x4   :  { %s33_s10 = sshll.u32 %s773_s30, 4  ;;  %p656_p0 = scmp.ne.s32.totalorder %s947_s1, %s655_s13  ;;  %s34_s10 = int_to_ptr.vmem [resolvable:$true] %s33_s10 }
   0x5   :  { %p659_p1 = scmp.lt.u32.totalorder %s655_s13, %s947_s1 }
   0x7   :  { %p661_p2 = pnand %p659_p1, %p656_p0 }
   0x9   :  { %664 = shalt.err (!%p661_p2)
}
   0xa   :  { %s665_s18 = scalar_lea.vmem %s34_s10, 1024  ;;  %p670_p4 = scmp.lt.s32.totalorder %s34_s10, %s34_s10 }
   0xb   :  { %p666_p3 = scmp.ne.s32.totalorder %s34_s10, %s665_s18  ;;  %p671_p5 = scmp.lt.s32.totalorder %s665_s18, %s665_s18 }
   0xd   :  { %p672_p6 = por %p671_p5, %p670_p4 }
   0xf   :  { %p673_p7 = pnand %p672_p6, %p666_p3 }
  0x11   :  { %676 = shalt.err (!%p673_p7)
}
  0x12   :  { %s774_s19 = smov 64   ;;  %s775_s20 = smov 4  }
  0x13   :  { %39 = dma.hbm_to_vmem [thread:$0]  %s947_s1, 1024, %s34_s10, [#allocation6], %s774_s19, %s774_s19, %s775_s20  }
  0x14   :  { %s776_s23 = smov [#allocation2]   ;;  %s777_s25 = smov [#allocation7]  }
  0x15   :  { %s24_s24 = sshll.u32 %s776_s23, 4  ;;  %s49_s26 = sshll.u32 %s777_s25, 4  ;;  %s25_s24 = int_to_ptr.vmem [resolvable:$true] %s24_s24  ;;  %s50_s26 = int_to_ptr.vmem [resolvable:$true] %s49_s26 }
  0x16   :  { %s677_s29 = scalar_lea.hbm %s946_s0, 64 }
  0x17   :  { %p678_p8 = scmp.ne.s32.totalorder %s946_s0, %s677_s29  ;;  %p681_p9 = scmp.lt.u32.totalorder %s677_s29, %s946_s0 }
  0x19   :  { %p683_p10 = pnand %p681_p9, %p678_p8 }
  0x1b   :  { %686 = shalt.err (!%p683_p10)
}
  0x1c   :  { %s687_s1 = scalar_lea.vmem %s25_s24, 64  ;;  %p692_p12 = scmp.lt.s32.totalorder %s25_s24, %s25_s24 }
  0x1d   :  { %p688_p11 = scmp.ne.s32.totalorder %s25_s24, %s687_s1  ;;  %p693_p13 = scmp.lt.s32.totalorder %s687_s1, %s687_s1 }
  0x1f   :  { %p694_p0 = por %p693_p13, %p692_p12 }
  0x21   :  { %p695_p1 = pnand %p694_p0, %p688_p11 }
  0x23   :  { %698 = shalt.err (!%p695_p1)
}
  0x24   :  { %27 = dma.hbm_to_vmem [thread:$0]  %s946_s0, 64, %s25_s24, [#allocation3]  }
  0x25   :  { %s699_s17 = scalar_lea.hbm %s950_s4, 1024 }
  0x26   :  { %p700_p2 = scmp.ne.s32.totalorder %s950_s4, %s699_s17  ;;  %p703_p3 = scmp.lt.u32.totalorder %s699_s17, %s950_s4 }
  0x28   :  { %p705_p4 = pnand %p703_p3, %p700_p2 }
  0x2a   :  { %708 = shalt.err (!%p705_p4)
}
  0x2b   :  { %s709_s25 = scalar_lea.vmem %s50_s26, 1024  ;;  %p714_p6 = scmp.lt.s32.totalorder %s50_s26, %s50_s26 }
  0x2c   :  { %p710_p5 = scmp.ne.s32.totalorder %s50_s26, %s709_s25  ;;  %p715_p7 = scmp.lt.s32.totalorder %s709_s25, %s709_s25 }
  0x2e   :  { %p716_p8 = por %p715_p7, %p714_p6 }
  0x30   :  { %p717_p9 = pnand %p716_p8, %p710_p5 }
  0x32   :  { %720 = shalt.err (!%p717_p9)
}
  0x33   :  { %55 = dma.hbm_to_vmem [thread:$0]  %s950_s4, 1024, %s50_s26, [#allocation6], %s774_s19, %s774_s19, %s775_s20  }
  0x34   :  { %s778_s27 = smov [#allocation8]   ;;  %s721_s11 = scalar_lea.hbm %s953_s7, 1024 }
  0x35   :  { %s65_s28 = sshll.u32 %s778_s27, 4  ;;  %p722_p10 = scmp.ne.s32.totalorder %s953_s7, %s721_s11  ;;  %s66_s28 = int_to_ptr.vmem [resolvable:$true] %s65_s28 }
  0x36   :  { %p725_p11 = scmp.lt.u32.totalorder %s721_s11, %s953_s7 }
  0x38   :  { %p727_p12 = pnand %p725_p11, %p722_p10 }
  0x3a   :  { %730 = shalt.err (!%p727_p12)
}
  0x3b   :  { %s731_s14 = scalar_lea.vmem %s66_s28, 1024  ;;  %p736_p0 = scmp.lt.s32.totalorder %s66_s28, %s66_s28 }
  0x3c   :  { %p732_p13 = scmp.ne.s32.totalorder %s66_s28, %s731_s14  ;;  %p737_p1 = scmp.lt.s32.totalorder %s731_s14, %s731_s14 }
  0x3e   :  { %p738_p2 = por %p737_p1, %p736_p0 }
  0x40   :  { %p739_p3 = pnand %p738_p2, %p732_p13 }
  0x42   :  { %742 = shalt.err (!%p739_p3)
}
  0x43   :  { %71 = dma.hbm_to_vmem [thread:$0]  %s953_s7, 1024, %s66_s28, [#allocation9], %s774_s19, %s774_s19, %s775_s20  }
  0x44   :  { %765 = dma.done.wait [#allocation3], 64  }
  0x45   :  { %766 = vsyncadd [#allocation3], 4294967232 }
  0x46   :  { %767 = dma.done.wait [#allocation6], 2048  }
  0x47   :  { %768 = vsyncadd [#allocation6], 4294965248 }
  0x48   :  { %769 = dma.done.wait [#allocation9], 1024  }
  0x49   :  { %770 = vsyncadd [#allocation9], 4294966272  ;;  %v779_v0 = vmov 0.0   ;;  %vm780_vm0 = vmmov 0   ;;  %v627_v1 = vld [vmem:[#allocation5] sm:$0xff]   ;;  %v628_v2 = vld [vmem:[#allocation5 + $0x8] sm:$0xff]   ;;  %v328_v47 = vlaneseq }
  0x4a   :  { %578 = vmatprep.subr.bf16.mxu1 %v779_v0  ;;  %594 = vmatprep.mubr.msk.bf16.mxu1 %vm780_vm0, %v779_v0  ;;  %v629_v3 = vld [vmem:[#allocation5 + $0x10] sm:$0xff]   ;;  %v630_v4 = vld [vmem:[#allocation5 + $0x18] sm:$0xff]   ;;  %v635_v5 = vld [vmem:[#allocation8] sm:$0xff]   ;;  %s781_s22 = smov [#allocation10]  }
  0x4b   :  { %558 = vmatprep.subr.bf16.mxu0 %v779_v0  ;;  %574 = vmatprep.mubr.msk.bf16.mxu0 %vm780_vm0, %v779_v0  ;;  %v636_v6 = vld [vmem:[#allocation8 + $0x8] sm:$0xff]   ;;  %v631_v7 = vld [vmem:[#allocation5 + $0x20] sm:$0xff]   ;;  %v633_v9 = vld [vmem:[#allocation5 + $0x30] sm:$0xff]   ;;  %v329_v48 = vshrl.u32 %v328_v47, 7  ;;  %s493_s23 = sshll.u32 %s781_s22, 4  ;;  %s494_s23 = int_to_ptr.vmem [resolvable:$true] %s493_s23 }
  0x4c   :  { %579 = vmatpush3.bf16.msra.mxu1 %v627_v1  ;;  %559 = vmatpush3.bf16.msra.mxu0 %v635_v5  ;;  %v632_v8 = vld [vmem:[#allocation5 + $0x28] sm:$0xff]   ;;  %v634_v10 = vld [vmem:[#allocation5 + $0x38] sm:$0xff]   ;;  %v637_v12 = vld [vmem:[#allocation8 + $0x10] sm:$0xff]   ;;  %p748_p5 = scmp.lt.s32.totalorder %s494_s23, %s494_s23 }
  0x4d   :  { %580 = vmatprep.subr.bf16.mxu1 %v779_v0  ;;  %560 = vmatprep.subr.bf16.mxu0 %v779_v0  ;;  %v87_v11 = vld [vmem:[#allocation2] sm:$0xf]  ;;  %v639_v14 = vld [vmem:[#allocation8 + $0x20] sm:$0xff]   ;;  %v640_v15 = vld [vmem:[#allocation8 + $0x28] sm:$0xff]   ;;  %v330_v50 = vsub.s32 0, %v329_v48 }
  0x4e   :  { %v638_v13 = vld [vmem:[#allocation8 + $0x18] sm:$0xff]   ;;  %v641_v16 = vld [vmem:[#allocation8 + $0x30] sm:$0xff]   ;;  %v643_v18 = vld [vmem:[#allocation7] sm:$0xff]  }
  0x4f   :  { %v642_v17 = vld [vmem:[#allocation8 + $0x38] sm:$0xff]   ;;  %v644_v19 = vld [vmem:[#allocation7 + $0x8] sm:$0xff]   ;;  %v645_v20 = vld [vmem:[#allocation7 + $0x10] sm:$0xff]  }
  0x50   :  { %581 = vmatpush3.bf16.msra.mxu1 %v628_v2  ;;  %561 = vmatpush3.bf16.msra.mxu0 %v636_v6  ;;  %v646_v21 = vld [vmem:[#allocation7 + $0x18] sm:$0xff]   ;;  %v647_v22 = vld [vmem:[#allocation7 + $0x20] sm:$0xff]   ;;  %v648_v23 = vld [vmem:[#allocation7 + $0x28] sm:$0xff]  }
  0x51   :  { %582 = vmatprep.subr.bf16.mxu1 %v779_v0  ;;  %562 = vmatprep.subr.bf16.mxu0 %v779_v0  ;;  %v649_v24 = vld [vmem:[#allocation7 + $0x30] sm:$0xff]   ;;  %v650_v25 = vld [vmem:[#allocation7 + $0x38] sm:$0xff]  }
  0x52   :  { %v305_v49 = vld [vmem:[%s948_s2] sm:$0x1] }
  0x53   :  { %v521_v54 = vld [vmem:[%s949_s3] ss:$0 sm:$0xff] }
  0x54   :  { %583 = vmatpush3.bf16.msra.mxu1 %v629_v3  ;;  %563 = vmatpush3.bf16.msra.mxu0 %v637_v12 }
  0x55   :  { %584 = vmatprep.subr.bf16.mxu1 %v779_v0  ;;  %564 = vmatprep.subr.bf16.mxu0 %v779_v0 }
  0x58   :  { %585 = vmatpush3.bf16.msra.mxu1 %v630_v4  ;;  %565 = vmatpush3.bf16.msra.mxu0 %v638_v13 }
  0x59   :  { %586 = vmatprep.subr.bf16.mxu1 %v779_v0  ;;  %566 = vmatprep.subr.bf16.mxu0 %v779_v0 }
  0x5c   :  { %587 = vmatpush3.bf16.msra.mxu1 %v631_v7  ;;  %567 = vmatpush3.bf16.msra.mxu0 %v639_v14 }
  0x5d   :  { %588 = vmatprep.subr.bf16.mxu1 %v779_v0  ;;  %568 = vmatprep.subr.bf16.mxu0 %v779_v0 }
  0x60   :  { %589 = vmatpush3.bf16.msra.mxu1 %v632_v8  ;;  %569 = vmatpush3.bf16.msra.mxu0 %v640_v15 }
  0x61   :  { %590 = vmatprep.subr.bf16.mxu1 %v779_v0  ;;  %570 = vmatprep.subr.bf16.mxu0 %v779_v0 }
  0x64   :  { %591 = vmatpush3.bf16.msra.mxu1 %v633_v9  ;;  %571 = vmatpush3.bf16.msra.mxu0 %v641_v16 }
  0x65   :  { %592 = vmatprep.subr.bf16.mxu1 %v779_v0  ;;  %572 = vmatprep.subr.bf16.mxu0 %v779_v0 }
  0x68   :  { %593 = vmatpush3.bf16.msra.mxu1 %v634_v10  ;;  %573 = vmatpush3.bf16.msra.mxu0 %v642_v17 }
  0x69   :  { %598 = vmatprep.subr.bf16.mxu0 %v779_v0 }
  0x6b   :  { %595 = vmatmul.mubr.bf16.vlgmr.msra.gmra.mrb[0].mxu1 %v87_v11  ;;  %575 = vmatmul.mubr.bf16.vlgmr.msra.gmra.mrb[0].mxu0 %v87_v11 }
  0x6c   :  { %614 = vmatprep.mubr.msk.bf16.mxu0 %vm780_vm0, %v779_v0  ;;  %599 = vmatpush3.bf16.msra.mxu0 %v643_v18 }
  0x6d   :  { %600 = vmatprep.subr.bf16.mxu0 %v779_v0 }
  0x70   :  { %601 = vmatpush3.bf16.msra.mxu0 %v644_v19 }
  0x71   :  { %602 = vmatprep.subr.bf16.mxu0 %v779_v0 }
  0x74   :  { %603 = vmatpush3.bf16.msra.mxu0 %v645_v20 }
  0x75   :  { %604 = vmatprep.subr.bf16.mxu0 %v779_v0 }
  0x78   :  { %605 = vmatpush3.bf16.msra.mxu0 %v646_v21  ;;  %v504_v21 = vld [vmem:[%s954_s8] ss:$0 sm:$0xff] }
  0x79   :  { %606 = vmatprep.subr.bf16.mxu0 %v779_v0 }
  0x7c   :  { %607 = vmatpush3.bf16.msra.mxu0 %v647_v22  ;;  %v448_v22 = vld [vmem:[%s951_s5] sm:$0x1]  ;;  %s743_s5 = scalar_lea.vmem %s494_s23, 128 }
  0x7d   :  { %608 = vmatprep.subr.bf16.mxu0 %v779_v0  ;;  %p744_p4 = scmp.ne.s32.totalorder %s494_s23, %s743_s5  ;;  %p749_p6 = scmp.lt.s32.totalorder %s743_s5, %s743_s5 }
  0x7f   :  { %p750_p7 = por %p749_p6, %p748_p5 }
  0x80   :  { %609 = vmatpush3.bf16.msra.mxu0 %v648_v23 }
  0x81   :  { %610 = vmatprep.subr.bf16.mxu0 %v779_v0  ;;  %p751_p8 = pnand %p750_p7, %p744_p4 }
  0x84   :  { %611 = vmatpush3.bf16.msra.mxu0 %v649_v24 }
  0x85   :  { %612 = vmatprep.subr.bf16.mxu0 %v779_v0 }
  0x88   :  { %613 = vmatpush3.bf16.msra.mxu0 %v650_v25 }
 0x13e   :  { %v299_v26 = vpop.f32.mrb[0].mxu1  ;;  %v193_v60 = vpop.f32.mrb[0].mxu0 }
 0x13f   :  { %v307_v27 = vrot.slane %v299_v26, 4  ;;  %v596_v28 = vpop.f32.mrb[1].mxu1  ;;  %v576_v61 = vpop.f32.mrb[1].mxu0  ;;  %v194_v23 = vadd.f32 %v504_v21, %v193_v60 }
 0x140   :  { %v302_v29 = vpop.f32.mrb[2].mxu1  ;;  %v196_v62 = vpop.f32.mrb[2].mxu0  ;;  %v530_v28 = vld [vmem:[%s952_s6] ss:$0 sm:$0xff] }
 0x141   :  { %v308_v30 = vadd.f32 %v307_v27, %v299_v26  ;;  %v597_v31 = vpop.f32.mrb[3].mxu1  ;;  %v577_v63 = vpop.f32.mrb[3].mxu0 }
 0x143   :  { %v309_v32 = vrot.slane %v308_v30, 2 }
 0x145   :  { %v310_v33 = vadd.f32 %v309_v32, %v308_v30 }
 0x147   :  { %v311_v34 = vrot.slane %v310_v33, 1 }
 0x149   :  { %v312_v35 = vadd.f32 %v311_v34, %v310_v33 }
 0x14b   :  { %v314_v36 = vmul.f32 0.125, %v312_v35 }
 0x14d   :  { %v315_v37 = vsub.f32 %v299_v26, %v314_v36  ;;  %v199_v26 = vmul.f32 0.2, %v194_v23 }
 0x14f   :  { %v316_v38 = vmul.f32 %v315_v37, %v315_v37  ;;  %v200_v30 = vmax.f32 %v194_v23, %v199_v26 }
 0x151   :  { %v317_v39 = vrot.slane %v316_v38, 4 }
 0x153   :  { %v318_v40 = vadd.f32 %v317_v39, %v316_v38 }
 0x155   :  { %v319_v41 = vrot.slane %v318_v40, 2 }
 0x157   :  { %v320_v42 = vadd.f32 %v319_v41, %v318_v40 }
 0x159   :  { %v321_v43 = vrot.slane %v320_v42, 1 }
 0x15b   :  { %v322_v44 = vadd.f32 %v321_v43, %v320_v42 }
 0x15d   :  { %v323_v45 = vmul.f32 0.125, %v322_v44 }
 0x15f   :  { %v324_v46 = vadd.f32 1e-05, %v323_v45 }
 0x161   :  { %651 = vrsqrt.f32 %v324_v46 }
 0x16b   :  { %v652_v51 = vpop.eup %651 }
 0x16c   :  { %v326_v52 = vmul.f32 %v652_v51, %v305_v49 }
 0x16e   :  { %v331_v53 = vrot.slane %v326_v52, %v330_v50 }
 0x170   :  { %v333_v55 = vmul.f32 %v331_v53, %v315_v37 }
 0x172   :  { %v340_v56 = vadd.f32 %v521_v54, %v333_v55 }
 0x174   :  { %v341_v57 = vmul.f32 0.2, %v340_v56 }
 0x176   :  { %v342_v58 = vmax.f32 %v340_v56, %v341_v57 }
 0x178   :  { %v343_v59 = vpack.c.bf16 %v342_v58, %v342_v58 }
 0x17a   :  { %615 = vmatmul.mubr.bf16.vlgmr.msra.gmra.mrb[4].mxu0 %v343_v59 }
 0x24d   :  { %v442_v0 = vpop.f32.mrb[4].mxu0 }
 0x24e   :  { %v450_v1 = vrot.slane %v442_v0, 4  ;;  %v616_v2 = vpop.f32.mrb[5].mxu0 }
 0x24f   :  { %v445_v3 = vpop.f32.mrb[6].mxu0 }
 0x250   :  { %v451_v4 = vadd.f32 %v450_v1, %v442_v0  ;;  %v617_v5 = vpop.f32.mrb[7].mxu0 }
 0x252   :  { %v452_v6 = vrot.slane %v451_v4, 2 }
 0x254   :  { %v453_v7 = vadd.f32 %v452_v6, %v451_v4 }
 0x256   :  { %v454_v8 = vrot.slane %v453_v7, 1 }
 0x258   :  { %v455_v9 = vadd.f32 %v454_v8, %v453_v7 }
 0x25a   :  { %v456_v10 = vmul.f32 0.125, %v455_v9 }
 0x25c   :  { %v457_v11 = vsub.f32 %v442_v0, %v456_v10 }
 0x25e   :  { %v458_v12 = vmul.f32 %v457_v11, %v457_v11 }
 0x260   :  { %v459_v13 = vrot.slane %v458_v12, 4 }
 0x262   :  { %v460_v14 = vadd.f32 %v459_v13, %v458_v12 }
 0x264   :  { %v461_v15 = vrot.slane %v460_v14, 2 }
 0x266   :  { %v462_v16 = vadd.f32 %v461_v15, %v460_v14 }
 0x268   :  { %v463_v17 = vrot.slane %v462_v16, 1 }
 0x26a   :  { %v464_v18 = vadd.f32 %v463_v17, %v462_v16 }
 0x26c   :  { %v465_v19 = vmul.f32 0.125, %v464_v18 }
 0x26e   :  { %v466_v20 = vadd.f32 1e-05, %v465_v19 }
 0x270   :  { %653 = vrsqrt.f32 %v466_v20 }
 0x27a   :  { %v654_v24 = vpop.eup %653 }
 0x27b   :  { %v468_v25 = vmul.f32 %v654_v24, %v448_v22 }
 0x27d   :  { %v473_v27 = vrot.slane %v468_v25, %v330_v50 }
 0x27f   :  { %v475_v29 = vmul.f32 %v473_v27, %v457_v11 }
 0x281   :  { %v482_v31 = vadd.f32 %v530_v28, %v475_v29 }
 0x283   :  { %v483_v32 = vadd.f32 %v482_v31, %v200_v30 }
 0x285   :  { %v484_v33 = vmul.f32 0.2, %v483_v32 }
 0x287   :  { %v485_v34 = vmax.f32 %v483_v32, %v484_v33 }
 0x289   :  { %486 = vst [vmem:[#allocation10] sm:$0xff] %v485_v34 }
 0x28a   :  { %754 = shalt.err (!%p751_p8)
}
 0x28b   :  { %s755_s6 = scalar_lea.hbm %s955_s9, 128 }
 0x28c   :  { %p756_p9 = scmp.ne.s32.totalorder %s955_s9, %s755_s6  ;;  %p759_p10 = scmp.lt.u32.totalorder %s755_s6, %s955_s9 }
 0x28e   :  { %p761_p11 = pnand %p759_p10, %p756_p9 }
 0x290   :  { %764 = shalt.err (!%p761_p11)
}
 0x291   :  { %496 = dma.vmem_to_hbm [thread:$0]  %s494_s23, 128, %s955_s9, [#allocation4]  }
 0x292   :  { %771 = dma.done.wait [#allocation4], 128  }
 0x293   :  { %772 = vsyncadd [#allocation4], 4294967168 }
 0x294   :  { %500 = vsyncpa [#allocation3], 1 }
 0x295   :  { %501 = vsyncpa [#allocation6], 1 }
 0x296   :  { %502 = vsyncpa [#allocation9], 1 }
 0x297   :  { %503 = vsyncpa [#allocation4], 1 }

</bundles_post_ra>
